<compile_context>
chip_gen: v7x
topology: tpu7x:2x2x1
jax: 0.10.0
libtpu: 0.0.40
codegen_flags: <defaults>
</compile_context>

<pallas_src>
import functools

import jax
import jax.numpy as jnp
from jax.experimental import pallas as pl
from jax.experimental.pallas import tpu as pltpu

# bf16 operands + f32 accumulation (perf recommendation for v6e/v7x; also fine on
# v5e).  Switch to jnp.float32 if exact f32 conv semantics are required.
_COMPUTE_DTYPE = jnp.bfloat16


def _decoder_conv_kernel(lhs_ref, wb_ref, b_ref, o_ref):
    # lhs_ref: (B*H, K*W*Cin)    fused LHS: K vertically shifted row slabs on lanes
    # wb_ref : (K*W*Cin, W*Cout) banded conv weight (boundary taps pre-zeroed)
    # b_ref  : (1, W*Cout)       bias tiled over the W output columns (f32)
    # o_ref  : (B*H, W*Cout)     lane-dense output block
    acc = jnp.dot(lhs_ref[...], wb_ref[...], preferred_element_type=jnp.float32)
    o_ref[...] = (acc + b_ref[...]).astype(o_ref.dtype)


def _banded_weight(weight, W):
    """(Cout, Cin, K, K) -> (K, W*Cin, W*Cout) banded matrices (no horizontal pad).

    wb[kh, s*Cin + c, j*Cout + o] = weight[o, c, kh, s + pad - j]  if tap in range
                                  = 0                               otherwise
    so a row-flattened NHWC input row contracted against wb[kh] performs the
    horizontal (kw) and channel (c) part of the "same" convolution, with the
    column-boundary zeros handled by the zeroed out-of-band taps.
    """
    Cout, Cin, K, _ = weight.shape
    pad = (K - 1) // 2
    w_t = jnp.transpose(weight, (2, 3, 1, 0))                       # (kh, kw, c, o)
    kw_idx = jnp.arange(W)[:, None] + pad - jnp.arange(W)[None, :]  # (s, j): s+pad-j
    valid = (kw_idx >= 0) & (kw_idx < K)
    wb = w_t[:, jnp.clip(kw_idx, 0, K - 1)]                         # (kh, s, j, c, o)
    wb = jnp.where(valid[None, :, :, None, None], wb, 0.0)
    wb = jnp.transpose(wb, (0, 1, 3, 2, 4))                         # (kh, s, c, j, o)
    return wb.reshape(K, W * Cin, W * Cout)


@functools.partial(jax.jit, static_argnums=(3,))
def mnist_decoder_forward(state_input_layer, weight, bias, filter_size):
    """Pallas implementation of MNISTDecoder.forward.

    state_input_layer: list/tuple of NCHW arrays (concatenated on channel dim)
    weight: (Cout, Cin, K, K)   (PyTorch Conv2d weight layout)
    bias:   (Cout,)
    Returns NCHW output, same H/W as input ("same" padding, stride 1).
    """
    K = filter_size
    if K % 2 != 1:
        raise ValueError("MNISTDecoder Pallas kernel supports odd filter_size only")

    x = jnp.concatenate(list(state_input_layer), axis=1)            # (B, Cin, H, W)
    B, Cin, H, W = x.shape
    Cout = weight.shape[0]
    pad = (K - 1) // 2

    # ---- layout glue (fused by jit): NCHW -> row-padded NHWC, fused LHS ----
    xf = jnp.transpose(x, (0, 2, 3, 1))                              # (B, H, W, Cin)
    xf = jnp.pad(xf, ((0, 0), (pad, pad), (0, 0), (0, 0)))           # row pad only
    # Stack the K vertically shifted row slabs along the lane dim:
    #   lhs[:, kh*W*Cin:(kh+1)*W*Cin] = padded rows i+kh, row-flattened.
    lhs = jnp.concatenate(
        [xf[:, kh:kh + H].reshape(B * H, W * Cin) for kh in range(K)], axis=1
    ).astype(_COMPUTE_DTYPE)                                         # (B*H, K*W*Cin)

    wb = _banded_weight(weight, W).reshape(K * W * Cin, W * Cout)
    wb = wb.astype(_COMPUTE_DTYPE)                                   # (K*W*Cin, W*Cout)
    b_row = jnp.tile(bias, W).reshape(1, W * Cout).astype(jnp.float32)

    out = pl.pallas_call(
        _decoder_conv_kernel,
        out_shape=jax.ShapeDtypeStruct((B * H, W * Cout), x.dtype),
        grid_spec=pltpu.PrefetchScalarGridSpec(
            num_scalar_prefetch=0,
            grid=(1,),                     # whole problem (<0.5 MiB) fits VMEM
            in_specs=[
                pl.BlockSpec((B * H, K * W * Cin), lambda i: (0, 0)),
                pl.BlockSpec((K * W * Cin, W * Cout), lambda i: (0, 0)),
                pl.BlockSpec((1, W * Cout), lambda i: (0, 0)),
            ],
            out_specs=pl.BlockSpec((B * H, W * Cout), lambda i: (0, 0)),
        ),
        compiler_params=pltpu.CompilerParams(
            dimension_semantics=("arbitrary",),
        ),
    )(lhs, wb, b_row)

    # (B*H, W*Cout) -> (B, H, W, Cout) is metadata-only; final permute gives NCHW.
    return jnp.transpose(out.reshape(B, H, W, Cout), (0, 3, 1, 2))


def _init_conv_params(key, in_channels, out_channels, k):
    """Deterministic Conv2d init (PyTorch-style uniform bounds)."""
    kw, kb = jax.random.split(key)
    fan_in = in_channels * k * k
    bound = 1.0 / jnp.sqrt(fan_in)
    weight = jax.random.uniform(
        kw, (out_channels, in_channels, k, k), jnp.float32, -bound, bound
    )
    bias = jax.random.uniform(kb, (out_channels,), jnp.float32, -bound, bound)
    return weight, bias


if __name__ == "__main__":
    # Module config: shape=(16,16), input_channels=8, filter_size=3, num_features=16
    B, H, W = 2, 16, 16
    C_each = 4                      # two ConvLSTM state tensors of 4 channels each
    input_channels = 2 * C_each     # 8 after concat
    filter_size = 3
    num_features = 16

    key = jax.random.PRNGKey(0)
    k0, k1, kparam = jax.random.split(key, 3)
    state0 = jax.random.normal(k0, (B, C_each, H, W), jnp.float32)
    state1 = jax.random.normal(k1, (B, C_each, H, W), jnp.float32)
    weight, bias = _init_conv_params(kparam, input_channels, num_features, filter_size)

    out = mnist_decoder_forward([state0, state1], weight, bias, filter_size)
    out = jax.block_until_ready(out)
    assert out.shape == (B, num_features, H, W), out.shape

    # Reference check against XLA's conv (same semantics as nn.Conv2d).
    x_ref = jnp.concatenate([state0, state1], axis=1)
    ref = jax.lax.conv_general_dilated(
        x_ref, weight, window_strides=(1, 1), padding="SAME",
        dimension_numbers=("NCHW", "OIHW", "NCHW"),
    ) + bias[None, :, None, None]
    # bf16 operands / f32 accumulation -> loosened tolerance vs. the f32 reference.
    tol = 2e-2 if _COMPUTE_DTYPE == jnp.bfloat16 else 1e-4
    assert jnp.allclose(out, ref, atol=tol, rtol=tol), float(
        jnp.max(jnp.abs(out - ref))
    )

    print("KERNEL_OK")
</pallas_src>

<mosaic_0001>
module attributes {stable_mosaic.version = 11 : i64} {
  func.func @_decoder_conv_kernel(%arg0: i32, %arg1: memref<32x384xbf16, #tpu.memory_space<vmem>>, %arg2: memref<384x256xbf16, #tpu.memory_space<vmem>>, %arg3: memref<1x256xf32, #tpu.memory_space<vmem>>, %arg4: memref<32x256xf32, #tpu.memory_space<vmem>>) attributes {dimension_semantics = [#tpu.dimension_semantics<arbitrary>], iteration_bounds = array<i64: 1>, scalar_prefetch = 0 : i64, scratch_operands = 0 : i64, tpu.core_type = #tpu.core_type<tc>, window_params = [{pipeline_mode = #tpu.pipeline_mode<synchronous>, transform_indices = @transform_0, window_bounds = array<i64: 32, 384>}, {pipeline_mode = #tpu.pipeline_mode<synchronous>, transform_indices = @transform_1, window_bounds = array<i64: 384, 256>}, {pipeline_mode = #tpu.pipeline_mode<synchronous>, transform_indices = @transform_2, window_bounds = array<i64: 1, 256>}, {pipeline_mode = #tpu.pipeline_mode<synchronous>, transform_indices = @transform_3, window_bounds = array<i64: 32, 256>}]} {
    %c0 = arith.constant 0 : index
    %c0_0 = arith.constant 0 : index
    %0 = vector.load %arg1[%c0, %c0_0] : memref<32x384xbf16, #tpu.memory_space<vmem>>, vector<32x384xbf16>
    %c0_1 = arith.constant 0 : index
    %c0_2 = arith.constant 0 : index
    %1 = vector.load %arg2[%c0_1, %c0_2] : memref<384x256xbf16, #tpu.memory_space<vmem>>, vector<384x256xbf16>
    %cst = arith.constant dense<0.000000e+00> : vector<32x256xf32>
    %2 = tpu.matmul %0, %1, %cst {dimension_numbers = #tpu.dot_dimension_numbers<[1], [0], [0], [1], [0, 0, 1, 1], [], []>} : vector<32x384xbf16>, vector<384x256xbf16>, vector<32x256xf32> -> vector<32x256xf32>
    %c0_3 = arith.constant 0 : index
    %c0_4 = arith.constant 0 : index
    %3 = vector.load %arg3[%c0_3, %c0_4] : memref<1x256xf32, #tpu.memory_space<vmem>>, vector<1x256xf32>
    %4 = vector.broadcast %3 : vector<1x256xf32> to vector<32x256xf32>
    %5 = arith.addf %2, %4 : vector<32x256xf32>
    %c0_5 = arith.constant 0 : index
    %c0_6 = arith.constant 0 : index
    %6 = vector.load %arg4[%c0_5, %c0_6] : memref<32x256xf32, #tpu.memory_space<vmem>>, vector<32x256xf32>
    tpu.vector_store %arg4[%c0_5, %c0_6], %5 {strides = array<i32>} : memref<32x256xf32, #tpu.memory_space<vmem>>, vector<32x256xf32>,
    return
  }
  func.func @transform_0(%arg0: i32) -> (i32, i32) {
    %c0_i32 = arith.constant 0 : i32
    %c0_i32_0 = arith.constant 0 : i32
    %c0_i32_1 = arith.constant 0 : i32
    return %c0_i32, %c0_i32_0 : i32, i32
  }
  func.func @transform_1(%arg0: i32) -> (i32, i32) {
    %c0_i32 = arith.constant 0 : i32
    %c0_i32_0 = arith.constant 0 : i32
    %c0_i32_1 = arith.constant 0 : i32
    return %c0_i32, %c0_i32_0 : i32, i32
  }
  func.func @transform_2(%arg0: i32) -> (i32, i32) {
    %c0_i32 = arith.constant 0 : i32
    %c0_i32_0 = arith.constant 0 : i32
    %c0_i32_1 = arith.constant 0 : i32
    return %c0_i32, %c0_i32_0 : i32, i32
  }
  func.func @transform_3(%arg0: i32) -> (i32, i32) {
    %c0_i32 = arith.constant 0 : i32
    %c0_i32_0 = arith.constant 0 : i32
    %c0_i32_1 = arith.constant 0 : i32
    return %c0_i32, %c0_i32_0 : i32, i32
  }
}

</mosaic_0001>

<bundles_post_ra>
// kernel: tile.8
= control target key start
LH: loop header
LB: loop body
LE: loop exit
PB: predicated region body
PF: predicated region fallthrough
CT: control target
= control target key end

     0   :  { %s28_s0 = inlined_call_operand.vmem [shape: f32[16], index: 0, kind: input, shape index: {}]   ;;  %s29_s1 = inlined_call_operand.vmem [shape: f32[16,16], index: 1, kind: output, shape index: {}]  }
   0x1   :  { %v4_v0 = vld [vmem:[%s28_s0] ss:$0 sm:$0xff] }
   0x2   :  { %5 = vst [vmem:[%s29_s1] sm:$0xff] %v4_v0  ;;  %8 = vst [vmem:[%s29_s1 + $0x8] sm:$0xff] %v4_v0 }

// kernel: tile.9
= control target key start
LH: loop header
LB: loop body
LE: loop exit
PB: predicated region body
PF: predicated region fallthrough
CT: control target
= control target key end

     0   :  { %s7_s6 = smov 3  ;;  %s21_s9 = smov 3  ;;  %vm4_vm0 = vcmask 130048   ;;  %vm11_vm1 = vcmask 1048448   ;;  %vm18_vm2 = vcmask 917248   ;;  %vm25_vm3 = vcmask 786048   ;;  %s128_s0 = inlined_call_operand.vmem [shape: f32[16,16], index: 0, kind: input, shape index: {}]   ;;  %s129_s1 = inlined_call_operand.vmem [shape: f32[1,256], index: 1, kind: output, shape index: {}]  }
   0x1   :  { %v66_v0 = vld [vmem:[%s128_s0 + $0x7] ss:$8 sm:%s7_s6]   ;;  %s81_s10 = smov 112   ;;  %v68_v1 = vld [vmem:[%s128_s0 + $0x5] ss:$8 sm:%s21_s9]   ;;  %s14_s13 = smov 3 }
   0x2   :  { %9 = vrot.lane.b32.xlu0 %v66_v0, %s81_s10  ;;  %s82_s14 = smov 80   ;;  %v67_v2 = vld [vmem:[%s128_s0 + $0x6] ss:$8 sm:%s14_s13]   ;;  %s28_s17 = smov 3  ;;  %vm32_vm4 = vcmask 654848   ;;  %vm39_vm5 = vcmask 523648  }
   0x3   :  { %23 = vrot.lane.b32.xlu1 %v68_v1, %s82_s14  ;;  %v69_v3 = vld [vmem:[%s128_s0 + $0x4] ss:$8 sm:%s28_s17]   ;;  %s35_s20 = smov 3  ;;  %s42_s21 = smov 3  ;;  %vm46_vm6 = vcmask 392448   ;;  %vm53_vm7 = vcmask 261248  }
   0x4   :  { %s83_s22 = smov 96   ;;  %s84_s23 = smov 64   ;;  %v70_v4 = vld [vmem:[%s128_s0 + $0x3] ss:$8 sm:%s35_s20]   ;;  %v71_v5 = vld [vmem:[%s128_s0 + $0x2] ss:$8 sm:%s42_s21]  }
   0x5   :  { %s2_s26 = smov 3  ;;  %s49_s29 = smov 3 }
   0x6   :  { %16 = vrot.lane.b32.xlu0 %v67_v2, %s83_s22  ;;  %v3_v6 = vld [vmem:[%s128_s0] ss:$8 sm:%s2_s26]   ;;  %s85_s3 = smov 48   ;;  %s86_s4 = smov 32  }
   0x7   :  { %30 = vrot.lane.b32.xlu1 %v69_v3, %s84_s23  ;;  %5 = vst.msk [vmem:[#allocation0] ss:$8 sm:$0x3] %vm4_vm0, %v3_v6   ;;  %v72_v7 = vld [vmem:[%s128_s0 + $0x1] ss:$8 sm:%s49_s29]   ;;  %s87_s0 = smov 16  }
   0xa   :  { %37 = vrot.lane.b32.xlu0 %v70_v4, %s85_s3 }
   0xb   :  { %44 = vrot.lane.b32.xlu1 %v71_v5, %s86_s4 }
   0xe   :  { %51 = vrot.lane.b32.xlu0 %v72_v7, %s87_s0 }
  0x74   :  { %v10_v8 = vpop.permute.xlu0 %9  }
  0x75   :  { %12 = vst.msk [vmem:[#allocation0] ss:$8 sm:$0x3] %vm11_vm1, %v10_v8   ;;  %v24_v9 = vpop.permute.xlu1 %23  }
  0x78   :  { %v17_v10 = vpop.permute.xlu0 %16  }
  0x79   :  { %19 = vst.msk [vmem:[#allocation0] ss:$8 sm:$0x3] %vm18_vm2, %v17_v10   ;;  %v31_v11 = vpop.permute.xlu1 %30  }
  0x7a   :  { %26 = vst.msk [vmem:[#allocation0] ss:$8 sm:$0x3] %vm25_vm3, %v24_v9  }
  0x7b   :  { %33 = vst.msk [vmem:[#allocation0] ss:$8 sm:$0x3] %vm32_vm4, %v31_v11  }
  0x7c   :  { %v38_v12 = vpop.permute.xlu0 %37  }
  0x7d   :  { %40 = vst.msk [vmem:[#allocation0] ss:$8 sm:$0x3] %vm39_vm5, %v38_v12   ;;  %v45_v13 = vpop.permute.xlu1 %44  }
  0x7e   :  { %47 = vst.msk [vmem:[#allocation0] ss:$8 sm:$0x3] %vm46_vm6, %v45_v13  }
  0x80   :  { %v52_v14 = vpop.permute.xlu0 %51  }
  0x81   :  { %54 = vst.msk [vmem:[#allocation0] ss:$8 sm:$0x3] %vm53_vm7, %v52_v14  }
  0x88   :  { %v58_v15 = vld [vmem:[#allocation0] sm:$0x1]  ;;  %v62_v16 = vld [vmem:[#allocation0 + $0x8] sm:$0x1] }
  0x89   :  { %60 = vst [vmem:[%s129_s1] sm:$0x1] %v58_v15  ;;  %73 = vst [vmem:[%s129_s1 + $0x1] sm:$0x1] %v62_v16 }

// kernel: mnist_decoder_forward.1
= control target key start
LH: loop header
LB: loop body
LE: loop exit
PB: predicated region body
PF: predicated region fallthrough
CT: control target
= control target key end

     0   :  { %v624_v1 = vmov 0   ;;  %v73_v59 = vlaneseq  ;;  %s836_s1 = inlined_call_operand.vmem [shape: bf16[384,256], index: 1, kind: input, shape index: {}]   ;;  %s837_s0 = inlined_call_operand.vmem [shape: bf16[32,384], index: 0, kind: input, shape index: {}]   ;;  %s838_s2 = inlined_call_operand.vmem [shape: f32[1,256], index: 2, kind: input, shape index: {}]   ;;  %s839_s3 = inlined_call_operand.vmem [shape: f32[32,256], index: 3, kind: output, shape index: {}]  }
   0x1   :  { %v544_v0 = vld [vmem:[%s836_s1 + $0x4] ss:$8 sps:$4 sm:$0xff]   ;;  %440 = vmatprep.mubr.bf16.mxu0 %v624_v1  ;;  %v546_v2 = vld [vmem:[%s836_s1] ss:$8 sps:$4 sm:$0xff]   ;;  %v547_v3 = vld [vmem:[%s836_s1 + $0x14] ss:$8 sps:$4 sm:$0xff]  }
   0x2   :  { %355 = vmatprep.subr.bf16.mxu1 %v544_v0  ;;  %v549_v4 = vld [vmem:[%s836_s1 + $0x10] ss:$8 sps:$4 sm:$0xff]   ;;  %v550_v5 = vld [vmem:[%s836_s1 + $0x24] ss:$8 sps:$4 sm:$0xff]   ;;  %v552_v6 = vld [vmem:[%s836_s1 + $0x20] ss:$8 sps:$4 sm:$0xff]  }
   0x3   :  { %356 = vmatpush1.bf16.msra.mxu1 %v546_v2  ;;  %v553_v7 = vld [vmem:[%s836_s1 + $0x34] ss:$8 sps:$4 sm:$0xff]   ;;  %v555_v8 = vld [vmem:[%s836_s1 + $0x30] ss:$8 sps:$4 sm:$0xff]   ;;  %v568_v9 = vld [vmem:[%s836_s1 + $0x104] ss:$8 sps:$4 sm:$0xff]  }
   0x4   :  { %357 = vmatprep.subr.bf16.mxu1 %v547_v3  ;;  %v556_v10 = vld [vmem:[%s836_s1 + $0x44] ss:$8 sps:$4 sm:$0xff]   ;;  %v572_v11 = vld [vmem:[%s836_s1 + $0x100] ss:$8 sps:$4 sm:$0xff]   ;;  %408 = vmatprep.subr.bf16.mxu0 %v568_v9  ;;  %v574_v12 = vld [vmem:[%s836_s1 + $0x114] ss:$8 sps:$4 sm:$0xff]  }
   0x5   :  { %409 = vmatpush1.bf16.msra.mxu0 %v572_v11  ;;  %v558_v13 = vld [vmem:[%s836_s1 + $0x40] ss:$8 sps:$4 sm:$0xff]   ;;  %v559_v14 = vld [vmem:[%s836_s1 + $0x54] ss:$8 sps:$4 sm:$0xff]   ;;  %v578_v15 = vld [vmem:[%s836_s1 + $0x110] ss:$8 sps:$4 sm:$0xff]  }
   0x6   :  { %410 = vmatprep.subr.bf16.mxu0 %v574_v12  ;;  %v580_v16 = vld [vmem:[%s836_s1 + $0x124] ss:$8 sps:$4 sm:$0xff]   ;;  %v561_v17 = vld [vmem:[%s836_s1 + $0x50] ss:$8 sps:$4 sm:$0xff]   ;;  %v584_v18 = vld [vmem:[%s836_s1 + $0x120] ss:$8 sps:$4 sm:$0xff]  }
   0x7   :  { %358 = vmatpush1.bf16.msra.mxu1 %v549_v4  ;;  %v586_v19 = vld [vmem:[%s836_s1 + $0x134] ss:$8 sps:$4 sm:$0xff]   ;;  %v562_v20 = vld [vmem:[%s836_s1 + $0x64] ss:$8 sps:$4 sm:$0xff]   ;;  %v590_v21 = vld [vmem:[%s836_s1 + $0x130] ss:$8 sps:$4 sm:$0xff]  }
   0x8   :  { %359 = vmatprep.subr.bf16.mxu1 %v550_v5  ;;  %v564_v22 = vld [vmem:[%s836_s1 + $0x60] ss:$8 sps:$4 sm:$0xff]   ;;  %v592_v23 = vld [vmem:[%s836_s1 + $0x144] ss:$8 sps:$4 sm:$0xff]   ;;  %v565_v24 = vld [vmem:[%s836_s1 + $0x74] ss:$8 sps:$4 sm:$0xff]  }
   0x9   :  { %411 = vmatpush1.bf16.msra.mxu0 %v578_v15  ;;  %v567_v25 = vld [vmem:[%s836_s1 + $0x70] ss:$8 sps:$4 sm:$0xff]   ;;  %v596_v26 = vld [vmem:[%s836_s1 + $0x140] ss:$8 sps:$4 sm:$0xff]   ;;  %v598_v27 = vld [vmem:[%s836_s1 + $0x154] ss:$8 sps:$4 sm:$0xff]  }
   0xa   :  { %412 = vmatprep.subr.bf16.mxu0 %v580_v16  ;;  %v570_v28 = vld [vmem:[%s836_s1 + $0x84] ss:$8 sps:$4 sm:$0xff]   ;;  %v602_v29 = vld [vmem:[%s836_s1 + $0x150] ss:$8 sps:$4 sm:$0xff]   ;;  %v573_v30 = vld [vmem:[%s836_s1 + $0x80] ss:$8 sps:$4 sm:$0xff]  }
   0xb   :  { %360 = vmatpush1.bf16.msra.mxu1 %v552_v6  ;;  %v604_v31 = vld [vmem:[%s836_s1 + $0x164] ss:$8 sps:$4 sm:$0xff]   ;;  %v576_v32 = vld [vmem:[%s836_s1 + $0x94] ss:$8 sps:$4 sm:$0xff]   ;;  %v579_v33 = vld [vmem:[%s836_s1 + $0x90] ss:$8 sps:$4 sm:$0xff]  }
   0xc   :  { %361 = vmatprep.subr.bf16.mxu1 %v553_v7  ;;  %v618_v34 = vld [vmem:[%s837_s0 + $0x4] ss:$12 sps:$4 sm:$0xff]   ;;  %v608_v35 = vld [vmem:[%s836_s1 + $0x160] ss:$8 sps:$4 sm:$0xff]   ;;  %v610_v36 = vld [vmem:[%s836_s1 + $0x174] ss:$8 sps:$4 sm:$0xff]  }
   0xd   :  { %413 = vmatpush1.bf16.msra.mxu0 %v584_v18  ;;  %v582_v37 = vld [vmem:[%s836_s1 + $0xa4] ss:$8 sps:$4 sm:$0xff]   ;;  %387 = vmatprep.mubr.bf16.mxu1 %v618_v34  ;;  %v614_v38 = vld [vmem:[%s836_s1 + $0x170] ss:$8 sps:$4 sm:$0xff]   ;;  %v585_v39 = vld [vmem:[%s836_s1 + $0xa0] ss:$8 sps:$4 sm:$0xff]  }
   0xe   :  { %414 = vmatprep.subr.bf16.mxu0 %v586_v19  ;;  %v588_v40 = vld [vmem:[%s836_s1 + $0xb4] ss:$8 sps:$4 sm:$0xff]   ;;  %v591_v42 = vld [vmem:[%s836_s1 + $0xb0] ss:$8 sps:$4 sm:$0xff]   ;;  %v594_v43 = vld [vmem:[%s836_s1 + $0xc4] ss:$8 sps:$4 sm:$0xff]  }
   0xf   :  { %362 = vmatpush1.bf16.msra.mxu1 %v555_v8  ;;  %v619_v41 = vld [vmem:[%s837_s0 + $0x8] ss:$12 sps:$4 sm:$0xff]   ;;  %v622_v46 = vld [vmem:[%s837_s0 + $0x20] ss:$12 sps:$4 sm:$0xff]   ;;  %v603_v47 = vld [vmem:[%s836_s1 + $0xd0] ss:$8 sps:$4 sm:$0xff]  }
  0x10   :  { %363 = vmatprep.subr.bf16.mxu1 %v556_v10  ;;  %v597_v44 = vld [vmem:[%s836_s1 + $0xc0] ss:$8 sps:$4 sm:$0xff]   ;;  %v600_v45 = vld [vmem:[%s836_s1 + $0xd4] ss:$8 sps:$4 sm:$0xff]   ;;  %v606_v48 = vld [vmem:[%s836_s1 + $0xe4] ss:$8 sps:$4 sm:$0xff]  }
  0x11   :  { %415 = vmatpush1.bf16.msra.mxu0 %v590_v21  ;;  %v609_v49 = vld [vmem:[%s836_s1 + $0xe0] ss:$8 sps:$4 sm:$0xff]   ;;  %v612_v50 = vld [vmem:[%s836_s1 + $0xf4] ss:$8 sps:$4 sm:$0xff]   ;;  %v615_v51 = vld [vmem:[%s836_s1 + $0xf0] ss:$8 sps:$4 sm:$0xff]  }
  0x12   :  { %416 = vmatprep.subr.bf16.mxu0 %v592_v23  ;;  %v616_v52 = vld [vmem:[%s837_s0] ss:$12 sps:$4 sm:$0xff]   ;;  %v620_v53 = vld [vmem:[%s837_s0 + $0x1c] ss:$12 sps:$4 sm:$0xff]   ;;  %v623_v54 = vld [vmem:[%s837_s0 + $0x18] ss:$12 sps:$4 sm:$0xff]  }
  0x13   :  { %364 = vmatpush1.bf16.msra.mxu1 %v558_v13  ;;  %v74_v62 = vshrl.u32 %v73_v59, 7  ;;  %v71_v2 = vld [vmem:[%s838_s2] sm:$0x3] }
  0x14   :  { %365 = vmatprep.subr.bf16.mxu1 %v559_v14 }
  0x15   :  { %417 = vmatpush1.bf16.msra.mxu0 %v596_v26  ;;  %v79_v3 = vsub.s32 1, %v74_v62 }
  0x16   :  { %418 = vmatprep.subr.bf16.mxu0 %v598_v27 }
  0x17   :  { %366 = vmatpush1.bf16.msra.mxu1 %v561_v17  ;;  %v80_v5 = vrot.slane %v71_v2, %v79_v3 }
  0x18   :  { %367 = vmatprep.subr.bf16.mxu1 %v562_v20 }
  0x19   :  { %419 = vmatpush1.bf16.msra.mxu0 %v602_v29 }
  0x1a   :  { %420 = vmatprep.subr.bf16.mxu0 %v604_v31 }
  0x1b   :  { %368 = vmatpush1.bf16.msra.mxu1 %v564_v22 }
  0x1c   :  { %369 = vmatprep.subr.bf16.mxu1 %v565_v24 }
  0x1d   :  { %421 = vmatpush1.bf16.msra.mxu0 %v608_v35 }
  0x1e   :  { %422 = vmatprep.subr.bf16.mxu0 %v610_v36 }
  0x1f   :  { %370 = vmatpush1.bf16.msra.mxu1 %v567_v25 }
  0x20   :  { %371 = vmatprep.subr.bf16.mxu1 %v570_v28 }
  0x21   :  { %423 = vmatpush1.bf16.msra.mxu0 %v614_v38 }
  0x23   :  { %372 = vmatpush1.bf16.msra.mxu1 %v573_v30 }
  0x24   :  { %373 = vmatprep.subr.bf16.mxu1 %v576_v32  ;;  %441 = vmatmul.mubr.bf16.vlgmr.msra.gmra.mrb[0].mxu0 %v619_v41 }
  0x25   :  { %450 = vmatprep.mubr.bf16.mxu0 %v624_v1  ;;  %v75_v1 = vsub.s32 0, %v74_v62 }
  0x27   :  { %374 = vmatpush1.bf16.msra.mxu1 %v579_v33  ;;  %v76_v4 = vrot.slane %v71_v2, %v75_v1 }
  0x28   :  { %375 = vmatprep.subr.bf16.mxu1 %v582_v37 }
  0x2b   :  { %376 = vmatpush1.bf16.msra.mxu1 %v585_v39 }
  0x2c   :  { %377 = vmatprep.subr.bf16.mxu1 %v588_v40  ;;  %451 = vmatmul.mubr.bf16.gmra.mrb[4].mxu0 %v622_v46 }
  0x2f   :  { %378 = vmatpush1.bf16.msra.mxu1 %v591_v42 }
  0x30   :  { %379 = vmatprep.subr.bf16.mxu1 %v594_v43 }
  0x33   :  { %380 = vmatpush1.bf16.msra.mxu1 %v597_v44 }
  0x34   :  { %381 = vmatprep.subr.bf16.mxu1 %v600_v45 }
  0x37   :  { %382 = vmatpush1.bf16.msra.mxu1 %v603_v47 }
  0x38   :  { %383 = vmatprep.subr.bf16.mxu1 %v606_v48 }
  0x3b   :  { %384 = vmatpush1.bf16.msra.mxu1 %v609_v49 }
  0x3c   :  { %385 = vmatprep.subr.bf16.mxu1 %v612_v50 }
  0x3f   :  { %386 = vmatpush1.bf16.msra.mxu1 %v615_v51 }
  0x42   :  { %388 = vmatmul.mubr.bf16.vlgmr.msra.gmra.mrb[0].mxu1 %v616_v52 }
  0x43   :  { %397 = vmatprep.mubr.bf16.mxu1 %v620_v53 }
  0x4a   :  { %398 = vmatmul.mubr.bf16.gmra.mrb[4].mxu1 %v623_v54 }
  0xf7   :  { %v442_v55 = vpop.f32.mrb[0].mxu0 }
  0xf8   :  { %v444_v56 = vpop.f32.mrb[1].mxu0 }
  0xf9   :  { %v446_v57 = vpop.f32.mrb[2].mxu0 }
  0xfa   :  { %v448_v58 = vpop.f32.mrb[3].mxu0 }
  0xff   :  { %v452_v60 = vpop.f32.mrb[4].mxu0 }
 0x100   :  { %v454_v61 = vpop.f32.mrb[5].mxu0 }
 0x101   :  { %v456_v63 = vpop.f32.mrb[6].mxu0 }
 0x102   :  { %v458_v0 = vpop.f32.mrb[7].mxu0 }
 0x115   :  { %v389_v6 = vpop.f32.mrb[0].mxu1 }
 0x116   :  { %v390_v7 = vadd.f32 %v389_v6, %v76_v4  ;;  %v391_v8 = vpop.f32.mrb[1].mxu1 }
 0x117   :  { %v392_v9 = vadd.f32 %v391_v8, %v80_v5  ;;  %v393_v10 = vpop.f32.mrb[2].mxu1 }
 0x118   :  { %v443_v11 = vadd.f32 %v442_v55, %v390_v7  ;;  %v394_v12 = vadd.f32 %v393_v10, %v76_v4  ;;  %v395_v13 = vpop.f32.mrb[3].mxu1 }
 0x119   :  { %v445_v14 = vadd.f32 %v444_v56, %v392_v9  ;;  %v396_v15 = vadd.f32 %v395_v13, %v80_v5 }
 0x11a   :  { %461 = vst [vmem:[%s839_s3] sm:$0xff] %v443_v11  ;;  %v447_v16 = vadd.f32 %v446_v57, %v394_v12 }
 0x11b   :  { %462 = vst [vmem:[%s839_s3 + $0x8] sm:$0xff] %v445_v14  ;;  %v449_v17 = vadd.f32 %v448_v58, %v396_v15 }
 0x11c   :  { %463 = vst [vmem:[%s839_s3 + $0x10] sm:$0xff] %v447_v16 }
 0x11d   :  { %464 = vst [vmem:[%s839_s3 + $0x18] sm:$0xff] %v449_v17  ;;  %v399_v18 = vpop.f32.mrb[4].mxu1 }
 0x11e   :  { %v400_v19 = vadd.f32 %v399_v18, %v76_v4  ;;  %v401_v20 = vpop.f32.mrb[5].mxu1 }
 0x11f   :  { %v402_v21 = vadd.f32 %v401_v20, %v80_v5  ;;  %v403_v22 = vpop.f32.mrb[6].mxu1 }
 0x120   :  { %v453_v23 = vadd.f32 %v452_v60, %v400_v19  ;;  %v404_v24 = vadd.f32 %v403_v22, %v76_v4  ;;  %v405_v25 = vpop.f32.mrb[7].mxu1 }
 0x121   :  { %v455_v26 = vadd.f32 %v454_v61, %v402_v21  ;;  %v406_v27 = vadd.f32 %v405_v25, %v80_v5 }
 0x122   :  { %465 = vst [vmem:[%s839_s3 + $0x20] sm:$0xff] %v453_v23  ;;  %v457_v28 = vadd.f32 %v456_v63, %v404_v24 }
 0x123   :  { %466 = vst [vmem:[%s839_s3 + $0x28] sm:$0xff] %v455_v26  ;;  %v459_v29 = vadd.f32 %v458_v0, %v406_v27 }
 0x124   :  { %467 = vst [vmem:[%s839_s3 + $0x30] sm:$0xff] %v457_v28 }
 0x125   :  { %468 = vst [vmem:[%s839_s3 + $0x38] sm:$0xff] %v459_v29 }

</bundles_post_ra>
